<compile_context>
chip_gen: v6e
topology: v6e:2x2x1
jax: 0.10.0
libtpu: 0.0.40
codegen_flags: <defaults>
</compile_context>

<pallas_src>
import functools
import math

import jax
import jax.numpy as jnp
from jax import lax
from jax.experimental import pallas as pl
from jax.experimental.pallas import tpu as pltpu

BN_EPS = 1e-5


def _round_up(a, b):
    return ((a + b - 1) // b) * b


def _cdiv(a, b):
    return -(-a // b)


def _vmem_limit_bytes():
    # Derive a safe scoped-VMEM cap per generation (64 MiB/TC on v7x,
    # 128 MiB on v5e/v6e).  Falls back to a conservative value.
    try:
        cap = int(pltpu.get_tpu_info().vmem_capacity_bytes)
    except Exception:  # pragma: no cover - info query unavailable
        cap = 64 * 1024 * 1024
    return max(32 * 1024 * 1024, min(cap - 16 * 1024 * 1024, 100 * 1024 * 1024))


# ---------------------------------------------------------------------------
# Pass 1 (full-K variant): one MXU matmul per row tile + centered BN partials.
# ---------------------------------------------------------------------------
def _mm_stats_kernel_fullk(x_ref, w_ref, out_ref, stats_ref, *, inv_tm):
    # bf16 operands, f32 accumulation on the MXU.
    acc = jnp.dot(x_ref[...], w_ref[...], preferred_element_type=jnp.float32)
    # Per-row-tile BN partials from the f32 accumulator (before any downcast):
    #   s = column sums, q = column sums of squares centered at s/tm.
    s = jnp.sum(acc, axis=0, keepdims=True)          # (1, F)
    c = s * inv_tm                                   # provisional per-tile center
    d = acc - c
    q = jnp.sum(d * d, axis=0, keepdims=True)        # (1, F)
    stats_ref[0, 0:1, :] = s
    stats_ref[0, 1:2, :] = q
    out_ref[...] = acc.astype(out_ref.dtype)


# ---------------------------------------------------------------------------
# Pass 1 (K-tiled variant): accumulate in f32 scratch, epilogue on last K step.
# ---------------------------------------------------------------------------
def _mm_stats_kernel_ktiled(x_ref, w_ref, out_ref, stats_ref, acc_ref, *, nk, inv_tm):
    k = pl.program_id(1)
    prod = jnp.dot(x_ref[...], w_ref[...], preferred_element_type=jnp.float32)

    @pl.when(k == 0)
    def _():
        acc_ref[...] = prod          # direct write: no zero-fill + read-add sweep

    @pl.when(k > 0)
    def _():
        acc_ref[...] += prod

    @pl.when(k == nk - 1)
    def _():
        acc = acc_ref[...]
        s = jnp.sum(acc, axis=0, keepdims=True)
        c = s * inv_tm
        d = acc - c
        q = jnp.sum(d * d, axis=0, keepdims=True)
        stats_ref[0, 0:1, :] = s
        stats_ref[0, 1:2, :] = q
        out_ref[...] = acc.astype(out_ref.dtype)


# ---------------------------------------------------------------------------
# Pass 2: apply folded BatchNorm affine (y = pre * scale + shift). sigma = id.
# ---------------------------------------------------------------------------
def _bn_apply_kernel(pre_ref, p_ref, o_ref):
    scale = p_ref[0:1, :]            # (1, F)
    shift = p_ref[1:2, :]            # (1, F)
    o_ref[...] = (pre_ref[...].astype(jnp.float32) * scale + shift).astype(o_ref.dtype)


@jax.jit
def dense_forward(x, weight, bias, gamma, beta):
    # `bias` is accepted for interface parity with the PyTorch module but is
    # mathematically irrelevant: a constant per-column bias shifts the batch
    # mean by exactly that bias and leaves the variance unchanged, so it
    # cancels exactly under the training-mode BatchNorm that follows.
    del bias

    N, K = x.shape
    Kw, F = weight.shape
    assert K == Kw

    in_dtype = jnp.bfloat16                                  # MXU-native operands
    out_dtype = x.dtype
    pre_dtype = jnp.bfloat16 if out_dtype == jnp.bfloat16 else jnp.float32
    in_bytes = jnp.dtype(in_dtype).itemsize
    pre_bytes = jnp.dtype(pre_dtype).itemsize
    out_bytes = jnp.dtype(out_dtype).itemsize

    vmem_limit = _vmem_limit_bytes()
    budget = int(vmem_limit * 0.8)

    # ---- pass-1 tile selection (VMEM budgeted) ---------------------------
    tm_max = 512
    if N >= 64:
        # Keep >=2 row tiles so the second v7x TensorCore gets work on the
        # "parallel" row axis (harmless on single-TC v5e/v6e).
        tm_max = min(tm_max, _round_up(_cdiv(N, 2), 8))
    tm = min(tm_max, _round_up(N, 8))

    def p1_bytes(tm_, tk_, ktiled):
        return (2 * tm_ * tk_ * in_bytes            # x tile (double buffered)
                + 2 * tk_ * F * in_bytes            # weight tile (double buffered)
                + 2 * tm_ * F * pre_bytes           # resident pre-BN output block
                + (tm_ * F * 4 if ktiled else 0)    # f32 accumulator scratch
                + 2 * 2 * F * 4)                    # per-tile stats

    # Prefer a single full-K step: weights fetched once per row tile, no
    # accumulator read-modify-write sweeps (shrink tm if necessary).
    while tm > 32 and p1_bytes(tm, K, False) > budget:
        tm = max(32, _round_up(tm // 2, 8))

    if p1_bytes(tm, K, False) <= budget:
        ktiled = False
        tk, nk, Kp = K, 1, K
    else:
        ktiled = True
        tk = 512
        while tk > 128 and p1_bytes(tm, tk, True) > budget:
            tk //= 2
        tk = min(tk, _round_up(K, 128))
        nk = _cdiv(K, tk)
        Kp = nk * tk

    Np = _round_up(N, tm)
    nt = Np // tm
    inv_tm = 1.0 / tm

    # ---- pad only when misaligned, cast operands to bf16 for the MXU ------
    x_p = x
    if (Np, Kp) != (N, K):
        x_p = jnp.pad(x, ((0, Np - N), (0, Kp - K)))
    x_p = x_p.astype(in_dtype)
    w_p = weight
    if Kp != K:
        w_p = jnp.pad(weight, ((0, Kp - K), (0, 0)))
    w_p = w_p.astype(in_dtype)

    pre_shape = jax.ShapeDtypeStruct((Np, F), pre_dtype)
    stats_shape = jax.ShapeDtypeStruct((nt, 2, F), jnp.float32)

    # ---- pass 1: matmul + per-tile centered BN statistics -----------------
    if not ktiled:
        pre, stats = pl.pallas_call(
            functools.partial(_mm_stats_kernel_fullk, inv_tm=inv_tm),
            out_shape=(pre_shape, stats_shape),
            grid_spec=pltpu.PrefetchScalarGridSpec(
                num_scalar_prefetch=0,
                grid=(nt,),
                in_specs=[
                    pl.BlockSpec((tm, Kp), lambda i: (i, 0)),   # x row tile
                    pl.BlockSpec((Kp, F), lambda i: (0, 0)),    # full weight (resident)
                ],
                out_specs=[
                    pl.BlockSpec((tm, F), lambda i: (i, 0)),    # pre-BN output
                    pl.BlockSpec((1, 2, F), lambda i: (i, 0, 0)),
                ],
            ),
            compiler_params=pltpu.CompilerParams(
                dimension_semantics=("parallel",),
                vmem_limit_bytes=vmem_limit,
            ),
        )(x_p, w_p)
    else:
        pre, stats = pl.pallas_call(
            functools.partial(_mm_stats_kernel_ktiled, nk=nk, inv_tm=inv_tm),
            out_shape=(pre_shape, stats_shape),
            grid_spec=pltpu.PrefetchScalarGridSpec(
                num_scalar_prefetch=0,
                grid=(nt, nk),
                in_specs=[
                    pl.BlockSpec((tm, tk), lambda i, k: (i, k)),
                    pl.BlockSpec((tk, F), lambda i, k: (k, 0)),
                ],
                out_specs=[
                    pl.BlockSpec((tm, F), lambda i, k: (i, 0)),
                    pl.BlockSpec((1, 2, F), lambda i, k: (i, 0, 0)),
                ],
                scratch_shapes=[pltpu.VMEM((tm, F), jnp.float32)],
            ),
            compiler_params=pltpu.CompilerParams(
                dimension_semantics=("parallel", "arbitrary"),
                vmem_limit_bytes=vmem_limit,
            ),
        )(x_p, w_p)

    # ---- tiny O(nt*F) stats fold: Chan parallel-variance combine ----------
    s_t = stats[:, 0, :]                                         # (nt, F) column sums
    q_t = stats[:, 1, :]                                         # centered sums of squares
    cnt = jnp.where(jnp.arange(nt) < nt - 1, float(tm),
                    float(N - (nt - 1) * tm)).astype(jnp.float32)[:, None]
    pad = tm - cnt                                               # padded (all-zero) rows/tile
    c_t = s_t * inv_tm                                           # per-tile provisional center
    mu_t = s_t / cnt                                             # per-tile mean (valid rows)
    # Remove the padded-zero rows' contribution, re-center at the tile mean.
    m2_t = q_t - pad * c_t * c_t - cnt * (mu_t - c_t) ** 2
    mean = jnp.sum(s_t, axis=0) / N
    m2 = jnp.sum(m2_t + cnt * (mu_t - mean) ** 2, axis=0)        # Chan combine
    var = jnp.maximum(m2 / N, 0.0)                               # biased (BN training)
    scale = gamma.astype(jnp.float32) * lax.rsqrt(var + BN_EPS)
    shift = beta.astype(jnp.float32) - mean * scale
    params = jnp.stack([scale, shift], axis=0)                   # (2, F)

    # ---- pass 2: elementwise BN apply with large, independent row tiles ---
    target_bytes = min(28 * 1024 * 1024, budget // 2)
    target_rows = max(tm, target_bytes // max(1, 2 * F * (pre_bytes + out_bytes)))
    m = max(1, min(nt, target_rows // tm))
    if nt >= 2:
        m = min(m, nt // 2)          # keep >=2 steps for the second v7x TensorCore
    while nt % m:
        m -= 1
    tm2 = tm * m
    nt2 = Np // tm2

    out = pl.pallas_call(
        _bn_apply_kernel,
        out_shape=jax.ShapeDtypeStruct((Np, F), out_dtype),
        grid_spec=pltpu.PrefetchScalarGridSpec(
            num_scalar_prefetch=0,
            grid=(nt2,),
            in_specs=[
                pl.BlockSpec((tm2, F), lambda i: (i, 0)),
                pl.BlockSpec((2, F), lambda i: (0, 0)),
            ],
            out_specs=pl.BlockSpec((tm2, F), lambda i: (i, 0)),
        ),
        compiler_params=pltpu.CompilerParams(
            dimension_semantics=("parallel",),
            vmem_limit_bytes=vmem_limit,
        ),
    )(pre, params)

    if Np != N:
        out = out[:N]
    return out


def reference_forward(x, weight, bias, gamma, beta):
    # Matches the kernel's MXU numerics: bf16 operands, f32 accumulation,
    # then training-mode BatchNorm1d (biased variance) in f32.
    out = jnp.dot(x.astype(jnp.bfloat16), weight.astype(jnp.bfloat16),
                  preferred_element_type=jnp.float32)
    out = out + bias.astype(jnp.float32)
    mean = out.mean(axis=0, keepdims=True)
    var = ((out - mean) ** 2).mean(axis=0, keepdims=True)
    xhat = (out - mean) / jnp.sqrt(var + BN_EPS)
    return (gamma * xhat + beta).astype(x.dtype)   # sigma = identity


if __name__ == "__main__":
    # Small shapes consistent with the module: N nodes, in_features -> out_features.
    N, in_features, out_features = 64, 64, 128

    key = jax.random.PRNGKey(0)
    kx, kw, kb = jax.random.split(key, 3)

    x = jax.random.normal(kx, (N, in_features), dtype=jnp.float32)

    # reset_parameters(): stdv = 1/sqrt(out_features); weight, bias ~ U(-stdv, stdv)
    stdv = 1.0 / math.sqrt(out_features)
    weight = jax.random.uniform(
        kw, (in_features, out_features), minval=-stdv, maxval=stdv, dtype=jnp.float32
    )
    bias = jax.random.uniform(
        kb, (out_features,), minval=-stdv, maxval=stdv, dtype=jnp.float32
    )
    # BatchNorm1d default affine init: gamma = 1, beta = 0
    gamma = jnp.ones((out_features,), dtype=jnp.float32)
    beta = jnp.zeros((out_features,), dtype=jnp.float32)

    out = jax.block_until_ready(dense_forward(x, weight, bias, gamma, beta))
    ref = reference_forward(x, weight, bias, gamma, beta)
    assert out.shape == ref.shape and out.dtype == ref.dtype
    assert jnp.allclose(out, ref, atol=2e-3, rtol=2e-3), "mismatch vs reference"

    # Second case with non-tile-aligned N / K to exercise the padding path
    # (including the padded-row correction in the BN statistics fold).
    N2, K2 = 50, 40
    x2 = jax.random.normal(jax.random.PRNGKey(1), (N2, K2), dtype=jnp.float32)
    w2 = jax.random.uniform(
        jax.random.PRNGKey(2), (K2, out_features), minval=-stdv, maxval=stdv,
        dtype=jnp.float32,
    )
    out2 = jax.block_until_ready(dense_forward(x2, w2, bias, gamma, beta))
    ref2 = reference_forward(x2, w2, bias, gamma, beta)
    assert jnp.allclose(out2, ref2, atol=2e-3, rtol=2e-3), "mismatch (padded case)"

    print("KERNEL_OK")
</pallas_src>

<mosaic_0001>
module attributes {stable_mosaic.version = 11 : i64} {
  func.func @_mm_stats_kernel_fullk(%arg0: i32, %arg1: memref<32x64xbf16, #tpu.memory_space<vmem>>, %arg2: memref<64x128xbf16, #tpu.memory_space<vmem>>, %arg3: memref<32x128xf32, #tpu.memory_space<vmem>>, %arg4: memref<1x2x128xf32, #tpu.memory_space<vmem>>) attributes {dimension_semantics = [#tpu.dimension_semantics<parallel>], iteration_bounds = array<i64: 2>, scalar_prefetch = 0 : i64, scratch_operands = 0 : i64, tpu.core_type = #tpu.core_type<tc>, window_params = [{transform_indices = @transform_0, window_bounds = array<i64: 32, 64>}, {pipeline_mode = #tpu.pipeline_mode<synchronous>, transform_indices = @transform_1, window_bounds = array<i64: 64, 128>}, {transform_indices = @transform_2, window_bounds = array<i64: 32, 128>}, {transform_indices = @transform_3, window_bounds = array<i64: 1, 2, 128>}]} {
    %c0 = arith.constant 0 : index
    %c0_0 = arith.constant 0 : index
    %0 = vector.load %arg1[%c0, %c0_0] : memref<32x64xbf16, #tpu.memory_space<vmem>>, vector<32x64xbf16>
    %c0_1 = arith.constant 0 : index
    %c0_2 = arith.constant 0 : index
    %1 = vector.load %arg2[%c0_1, %c0_2] : memref<64x128xbf16, #tpu.memory_space<vmem>>, vector<64x128xbf16>
    %cst = arith.constant dense<0.000000e+00> : vector<32x128xf32>
    %2 = tpu.matmul %0, %1, %cst {dimension_numbers = #tpu.dot_dimension_numbers<[1], [0], [0], [1], [0, 0, 1, 1], [], []>} : vector<32x64xbf16>, vector<64x128xbf16>, vector<32x128xf32> -> vector<32x128xf32>
    %cst_3 = arith.constant dense<0.000000e+00> : vector<128xf32>
    %3 = vector.multi_reduction <add>, %2, %cst_3 [0] : vector<32x128xf32> to vector<128xf32>
    %4 = vector.shape_cast %3 : vector<128xf32> to vector<1x128xf32>
    %cst_4 = arith.constant 3.125000e-02 : f32
    %5 = vector.broadcast %cst_4 : f32 to vector<1x128xf32>
    %6 = arith.mulf %4, %5 : vector<1x128xf32>
    %7 = vector.broadcast %6 : vector<1x128xf32> to vector<32x128xf32>
    %8 = arith.subf %2, %7 : vector<32x128xf32>
    %9 = arith.mulf %8, %8 : vector<32x128xf32>
    %cst_5 = arith.constant dense<0.000000e+00> : vector<128xf32>
    %10 = vector.multi_reduction <add>, %9, %cst_5 [0] : vector<32x128xf32> to vector<128xf32>
    %11 = vector.shape_cast %10 : vector<128xf32> to vector<1x128xf32>
    %c0_6 = arith.constant 0 : index
    %c0_7 = arith.constant 0 : index
    %c0_8 = arith.constant 0 : index
    %12 = vector.load %arg4[%c0_6, %c0_7, %c0_8] : memref<1x2x128xf32, #tpu.memory_space<vmem>>, vector<1x1x128xf32>
    %13 = vector.shape_cast %12 : vector<1x1x128xf32> to vector<1x128xf32>
    %14 = vector.shape_cast %4 : vector<1x128xf32> to vector<1x1x128xf32>
    tpu.vector_store %arg4[%c0_6, %c0_7, %c0_8], %14 {strides = array<i32>} : memref<1x2x128xf32, #tpu.memory_space<vmem>>, vector<1x1x128xf32>,
    %c0_9 = arith.constant 0 : index
    %c1 = arith.constant 1 : index
    %c0_10 = arith.constant 0 : index
    %15 = vector.load %arg4[%c0_9, %c1, %c0_10] : memref<1x2x128xf32, #tpu.memory_space<vmem>>, vector<1x1x128xf32>
    %16 = vector.shape_cast %15 : vector<1x1x128xf32> to vector<1x128xf32>
    %17 = vector.shape_cast %11 : vector<1x128xf32> to vector<1x1x128xf32>
    tpu.vector_store %arg4[%c0_9, %c1, %c0_10], %17 {strides = array<i32>} : memref<1x2x128xf32, #tpu.memory_space<vmem>>, vector<1x1x128xf32>,
    %c0_11 = arith.constant 0 : index
    %c0_12 = arith.constant 0 : index
    %18 = vector.load %arg3[%c0_11, %c0_12] : memref<32x128xf32, #tpu.memory_space<vmem>>, vector<32x128xf32>
    tpu.vector_store %arg3[%c0_11, %c0_12], %2 {strides = array<i32>} : memref<32x128xf32, #tpu.memory_space<vmem>>, vector<32x128xf32>,
    return
  }
  func.func @transform_0(%arg0: i32) -> (i32, i32) {
    %c0_i32 = arith.constant 0 : i32
    %c0_i32_0 = arith.constant 0 : i32
    return %arg0, %c0_i32 : i32, i32
  }
  func.func @transform_1(%arg0: i32) -> (i32, i32) {
    %c0_i32 = arith.constant 0 : i32
    %c0_i32_0 = arith.constant 0 : i32
    %c0_i32_1 = arith.constant 0 : i32
    return %c0_i32, %c0_i32_0 : i32, i32
  }
  func.func @transform_2(%arg0: i32) -> (i32, i32) {
    %c0_i32 = arith.constant 0 : i32
    %c0_i32_0 = arith.constant 0 : i32
    return %arg0, %c0_i32 : i32, i32
  }
  func.func @transform_3(%arg0: i32) -> (i32, i32, i32) {
    %c0_i32 = arith.constant 0 : i32
    %c0_i32_0 = arith.constant 0 : i32
    %c0_i32_1 = arith.constant 0 : i32
    return %arg0, %c0_i32, %c0_i32_0 : i32, i32, i32
  }
}

module attributes {stable_mosaic.version = 11 : i64} {
  func.func @_bn_apply_kernel(%arg0: i32, %arg1: memref<32x128xf32, #tpu.memory_space<vmem>>, %arg2: memref<2x128xf32, #tpu.memory_space<vmem>>, %arg3: memref<32x128xf32, #tpu.memory_space<vmem>>) attributes {dimension_semantics = [#tpu.dimension_semantics<parallel>], iteration_bounds = array<i64: 2>, scalar_prefetch = 0 : i64, scratch_operands = 0 : i64, tpu.core_type = #tpu.core_type<tc>, window_params = [{transform_indices = @transform_0, window_bounds = array<i64: 32, 128>}, {pipeline_mode = #tpu.pipeline_mode<synchronous>, transform_indices = @transform_1, window_bounds = array<i64: 2, 128>}, {transform_indices = @transform_2, window_bounds = array<i64: 32, 128>}]} {
    %c0 = arith.constant 0 : index
    %c0_0 = arith.constant 0 : index
    %0 = vector.load %arg2[%c0, %c0_0] : memref<2x128xf32, #tpu.memory_space<vmem>>, vector<1x128xf32>
    %c1 = arith.constant 1 : index
    %c0_1 = arith.constant 0 : index
    %1 = vector.load %arg2[%c1, %c0_1] : memref<2x128xf32, #tpu.memory_space<vmem>>, vector<1x128xf32>
    %c0_2 = arith.constant 0 : index
    %c0_3 = arith.constant 0 : index
    %2 = vector.load %arg1[%c0_2, %c0_3] : memref<32x128xf32, #tpu.memory_space<vmem>>, vector<32x128xf32>
    %3 = vector.broadcast %0 : vector<1x128xf32> to vector<32x128xf32>
    %4 = arith.mulf %2, %3 : vector<32x128xf32>
    %5 = vector.broadcast %1 : vector<1x128xf32> to vector<32x128xf32>
    %6 = arith.addf %4, %5 : vector<32x128xf32>
    %c0_4 = arith.constant 0 : index
    %c0_5 = arith.constant 0 : index
    %7 = vector.load %arg3[%c0_4, %c0_5] : memref<32x128xf32, #tpu.memory_space<vmem>>, vector<32x128xf32>
    tpu.vector_store %arg3[%c0_4, %c0_5], %6 {strides = array<i32>} : memref<32x128xf32, #tpu.memory_space<vmem>>, vector<32x128xf32>,
    return
  }
  func.func @transform_0(%arg0: i32) -> (i32, i32) {
    %c0_i32 = arith.constant 0 : i32
    %c0_i32_0 = arith.constant 0 : i32
    return %arg0, %c0_i32 : i32, i32
  }
  func.func @transform_1(%arg0: i32) -> (i32, i32) {
    %c0_i32 = arith.constant 0 : i32
    %c0_i32_0 = arith.constant 0 : i32
    %c0_i32_1 = arith.constant 0 : i32
    return %c0_i32, %c0_i32_0 : i32, i32
  }
  func.func @transform_2(%arg0: i32) -> (i32, i32) {
    %c0_i32 = arith.constant 0 : i32
    %c0_i32_0 = arith.constant 0 : i32
    return %arg0, %c0_i32 : i32, i32
  }
}

</mosaic_0001>

<bundles_post_ra>
// kernel: dense_forward.3
= control target key start
LH: loop header
LB: loop body
LE: loop exit
PB: predicated region body
PF: predicated region fallthrough
CT: control target
= control target key end

     0   :  { %7 = vsyncpa [#allocation3], 0  ;;  %s494_s0 = inlined_call_operand.vmem [shape: f32[64,128], index: 0, kind: input, shape index: {}]   ;;  %s495_s1 = inlined_call_operand.vmem [shape: f32[2,128], index: 1, kind: input, shape index: {}]   ;;  %s496_s2 = inlined_call_operand.hbm [shape: f32[64,128], index: 2, kind: output, shape index: {}]  }
   0x1   :  { %9 = vsyncpa [#allocation3 + $0x1], 0  ;;  %s383_s9 = smov 0   ;;  %s385_s10 = smov 0  }
   0x2   :  { %s387_s11 = smov 0   ;;  %s389_s12 = smov 0  }
   0x3 LB: > { %s404_s13 = sadd.s32 4294967295, %s363_s12   ;;  %s247_s14 = sadd.s32 4294967294, %s363_s12   ;;  %s363_s12 = sphi %s389_s12, %s502_s12   ;;  %s359_s11 = sphi %s387_s11, %s501_s11   ;;  %s355_s10 = sphi %s385_s10, %s500_s10   ;;  %s351_s9 = sphi %s383_s9, %s499_s9  }
   0x4   : > { %s408_s15 = sadd.s32 1, %s363_s12   ;;  %s69_s16 = sadd.s32 1, %s359_s11 }
   0x5   : > { %s66_s17 = ssub.s32 %s363_s12, %s408_s15  ;;  %p79_p0 = scmp.ne.s32.totalorder %s359_s11, %s355_s10 }
   0x6   : > { %p67_p1 = scmp.eq.s32.totalorder %s66_s17, 0  ;;  %p80_p2 = scmp.eq.s32.totalorder %s404_s13, 1 }
   0x7   : > { %p85_p3 = scmp.ne.s32.totalorder %s355_s10, %s351_s9  ;;  %p86_p4 = scmp.eq.s32.totalorder %s247_s14, 1 }
   0x8   : > { %s419_s18 = scalar_select %p67_p1, %s359_s11, %s69_s16  }
   0x9   : > { %p421_p5 = por %p80_p2, %p79_p0  ;;  %p425_p6 = por %p86_p4, %p85_p3 }
   0xa   : > { %p250_p7 = scmp.ge.s32.totalorder %s363_s12, 1  ;;  %p116_p8 = scmp.lt.s32.totalorder %s363_s12, 3 }
   0xc   : > { %p117_p9 = pnand %p250_p7, %p116_p8 }
   0xd   : > { %s135_s21 = sand.u32 (!%p117_p9), 1, %s355_s10   ;;  %s252_s22 = sshll.u32 (!%p117_p9), %s404_s13, 2 }
   0xe   : > { %120 = sbr.rel (%p117_p9) target bundleno = 42 (0x2a), region = 28  ;;  %s251_s23 = sshll.u32 (!%p117_p9), %s135_s21, 5 }
   0xf   : > { %p139_p10 = scmp.lt.s32.totalorder (!%p117_p9), %s252_s22, 7  ;;  %s137_s4 = scalar_lea.vmem (!%p117_p9), [#allocation2], %s251_s23 }
  0x10   : > { %s185_s5 = sshll.u32 (!%p117_p9), %s137_s4, 4  ;;  %s261_s6 = sshll.u32 (!%p117_p9), %s404_s13, 9  ;;  %s445_s5 = int_to_ptr.vmem [resolvable:$true] %s185_s5 }
  0x11   : > { %s450_s14 = scalar_lea.hbm (!%p117_p9), %s496_s2, %s261_s6  ;;  %s454_s13 = scalar_lea.sflag (!%p117_p9), [#allocation3], %s135_s21 }
  0x12   : > { %s303_s16 = scalar_lea.vmem (!%p117_p9), %s445_s5, 512  ;;  %s365_s17 = smov (!%p117_p9), [#allocation2]  }
  0x13   : > { %s504_s22 = smov (!%p139_p10, %s252_s22), 7  ;;  %v254_v0 = vld [vmem:[%s495_s1] ss:$0 sm:$0xff]  ;;  %v255_v1 = vld [vmem:[%s495_s1 + $0x1] ss:$0 sm:$0xff]  ;;  %p304_p11 = scmp.ne.s32.totalorder %s445_s5, %s303_s16 }
  0x14   : > { %s253_s24 = sshll.u32 %s504_s22, 3  ;;  %s307_s22 = sshll.u32 %s365_s17, 4  ;;  %s308_s22 = int_to_ptr.vmem [resolvable:$false] %s307_s22 }
  0x15   : > { %s142_s29 = scalar_lea.vmem %s494_s0, %s253_s24  ;;  %p305_p12 = pnand %p304_p11, %p421_p5 }
  0x16   : > { %v147_v2 = vld [vmem:[%s142_s29] sm:$0xff]  ;;  %v148_v3 = vld [vmem:[%s142_s29 + $0x8] sm:$0xff]  ;;  %v149_v4 = vld [vmem:[%s142_s29 + $0x10] sm:$0xff]  ;;  %s309_s23 = scalar_lea.vmem %s308_s22, 1024  ;;  %p310_p0 = scmp.lt.s32.totalorder %s445_s5, %s308_s22 }
  0x17   : > { %v155_v5 = vmul.f32 %v254_v0, %v147_v2  ;;  %v156_v6 = vmul.f32 %v254_v0, %v148_v3  ;;  %v157_v7 = vmul.f32 %v254_v0, %v149_v4  ;;  %v150_v8 = vld [vmem:[%s142_s29 + $0x18] sm:$0xff]  ;;  %p306_p13 = pneg %p305_p12  ;;  %p311_p1 = scmp.lt.s32.totalorder %s309_s23, %s303_s16 }
  0x18   : > { %v158_v9 = vmul.f32 %v254_v0, %v150_v8 }
  0x19   : > { %v163_v10 = vadd.f32 %v255_v1, %v155_v5  ;;  %v164_v11 = vadd.f32 %v255_v1, %v156_v6  ;;  %v165_v12 = vadd.f32 %v255_v1, %v157_v7  ;;  %p312_p2 = por %p311_p1, %p310_p0 }
  0x1a   : > { %v166_v13 = vadd.f32 %v255_v1, %v158_v9 }
  0x1b   : > { %167 = vst [vmem:[%s137_s4] sm:$0xff] %v163_v10  ;;  %168 = vst [vmem:[%s137_s4 + $0x8] sm:$0xff] %v164_v11  ;;  %p313_p3 = pnand %p312_p2, %p306_p13 }
  0x1c   : > { %169 = vst [vmem:[%s137_s4 + $0x10] sm:$0xff] %v165_v12  ;;  %170 = vst [vmem:[%s137_s4 + $0x18] sm:$0xff] %v166_v13 }
  0x1d   : > { %316 = shalt.err (!%p313_p3)
}
  0x1e   : > { %s317_s21 = scalar_lea.hbm %s450_s14, 512  ;;  %s321_s26 = scalar_lea.hbm %s496_s2, 1024 }
  0x1f   : > { %p318_p4 = scmp.ne.s32.totalorder %s450_s14, %s317_s21  ;;  %p322_p9 = scmp.lt.s32.totalorder %s450_s14, %s496_s2 }
  0x20   : > { %p323_p10 = scmp.lt.s32.totalorder %s321_s26, %s317_s21 }
  0x21   : > { %p319_p7 = pnand %p318_p4, %p421_p5 }
  0x22   : > { %p324_p11 = por %p323_p10, %p322_p9 }
  0x23   : > { %p320_p8 = pneg %p319_p7 }
  0x25   : > { %p325_p12 = pnand %p324_p11, %p320_p8 }
  0x27   : > { %328 = shalt.err (!%p325_p12)
}
  0x28   : > { %s366_s29 = smov 128   ;;  %s367_s30 = smov 8  }
  0x29   : > { %262 = dma.vmem_to_hbm [thread:$0]  (%p421_p5), %s445_s5, 512, %s450_s14, %s454_s13, %s366_s29, %s366_s29, %s367_s30  }
  0x2a PF: > { %p268_p13 = scmp.ge.s32.totalorder %s363_s12, 2  ;;  %s200_s3 = sand.u32 1, %s351_s9  }
  0x2b   : > { %s201_s4 = scalar_lea.sflag [#allocation3], %s200_s3 }
  0x2c   : > { %p265_p0 = pnand %p268_p13, %p425_p6 }
  0x2e   : > { %p266_p1 = pneg %p265_p0 }
  0x30   : > { %346 = dma.done.wait (%p266_p1), %s201_s4, 512  }
  0x31   : > { %348 = vsyncadd (%p266_p1), %s201_s4, 4294966784  ;;  %p12_p2 = scmp.ge.s32.totalorder %s408_s15, 4   ;;  %s499_s9 = smov %s355_s10 }
  0x32   : > { %s500_s10 = smov %s359_s11  ;;  %s501_s11 = smov %s419_s18 }
  0x33   : > { %s502_s12 = smov %s408_s15  ;;  %14 = sbr.rel (!%p12_p2) target bundleno = 3 (0x3), region = 63 }
  0x38   :  { %206 = vsyncpa [#allocation3], 1 }
  0x39   :  { %208 = vsyncpa [#allocation3 + $0x1], 1 }

// kernel: dense_forward.2
= control target key start
LH: loop header
LB: loop body
LE: loop exit
PB: predicated region body
PF: predicated region fallthrough
CT: control target
= control target key end

     0   :  { %s488_s12 = smov 0   ;;  %s525_s0 = inlined_call_operand.vmem [shape: bf16[64,64], index: 0, kind: input, shape index: {}]   ;;  %s526_s1 = inlined_call_operand.vmem [shape: bf16[64,128], index: 1, kind: input, shape index: {}]   ;;  %s527_s2 = inlined_call_operand.vmem [shape: f32[64,128], index: 2, kind: output, shape index: {0}]   ;;  %s528_s3 = inlined_call_operand.vmem [shape: f32[2,2,128], index: 3, kind: output, shape index: {1}]  }
   0x1 LB: > { %s494_s13 = sadd.s32 4294967295, %s466_s12   ;;  %p412_p0 = scmp.ge.s32.totalorder %s466_s12, 1  ;;  %s466_s12 = sphi %s488_s12, %s14_s12  }
   0x2   : > { %p141_p1 = scmp.lt.s32.totalorder %s466_s12, 3 }
   0x4   : > { %p142_p2 = pnand %p412_p0, %p141_p1 }
   0x5   : > { %s413_s16 = sshll.u32 (!%p142_p2), %s494_s13, 2  ;;  %p181_p4 = scmp.lt.s32.totalorder (!%p142_p2), %s494_s13, 1 }
   0x6   : > { %145 = sbr.rel (%p142_p2) target bundleno = 270 (0x10e), region = 28  ;;  %p170_p3 = scmp.lt.s32.totalorder (!%p142_p2), %s413_s16, 7 }
   0xb   : > { %v454_v0 = vld [vmem:[%s526_s1 + $0x18] sm:$0xff]   ;;  %v455_v1 = vld [vmem:[%s526_s1 + $0x10] sm:$0xff]   ;;  %s530_s16 = smov (!%p170_p3, %s413_s16), 7  ;;  %v456_v2 = vld [vmem:[%s526_s1 + $0x8] sm:$0xff]   ;;  %vm232_vm0 = vcmask 523264   ;;  %s532_s13 = smov (!%p181_p4, %s494_s13), 1 }
   0xc   : > { %434 = vmatprep.subr.bf16.mxu0 %v454_v0  ;;  %s414_s21 = sshll.u32 %s530_s16, 2  ;;  %v457_v4 = vld [vmem:[%s526_s1] sm:$0xff]   ;;  %s416_s27 = sshll.u32 %s530_s16, 3 }
   0xd   : > { %435 = vmatpush3.bf16.msra.mxu0 %v454_v0  ;;  %s173_s24 = scalar_lea.vmem %s525_s0, %s414_s21  ;;  %s179_s30 = scalar_lea.vmem %s527_s2, %s416_s27 }
   0xe   : > { %436 = vmatprep.subr.bf16.mxu0 %v455_v1  ;;  %v458_v3 = vld [vmem:[%s173_s24] sm:$0xff]   ;;  %v459_v5 = vld [vmem:[%s173_s24 + $0x8] sm:$0xff]   ;;  %s417_s4 = sshll.u32 %s532_s13, 1 }
   0xf   : > { %442 = vmatprep.mubr.msk.bf16.mxu0 %vm232_vm0, %v458_v3  ;;  %s184_s7 = scalar_lea.vmem %s528_s3, %s417_s4 }
  0x11   : > { %437 = vmatpush3.bf16.msra.mxu0 %v455_v1 }
  0x12   : > { %438 = vmatprep.subr.bf16.mxu0 %v456_v2 }
  0x15   : > { %439 = vmatpush3.bf16.msra.mxu0 %v456_v2 }
  0x16   : > { %440 = vmatprep.subr.bf16.mxu0 %v457_v4 }
  0x19   : > { %441 = vmatpush3.bf16.msra.mxu0 %v457_v4 }
  0x1c   : > { %443 = vmatmul.mubr.msk.bf16.vlgmr.msra.gmra.mxu0 %vm232_vm0, %v459_v5 }
  0xdc   : > { %v444_v6 = vpop.f32.mrf.mxu0 }
  0xdd   : > { %319 = vst [vmem:[%s179_s30 + $0x10] sm:$0xff] %v444_v6 }
  0xde   : > { %v273_v7 = vpop.f32.mrf.mxu0 }
  0xdf   : > { %317 = vst [vmem:[%s179_s30] sm:$0xff] %v273_v7 }
  0xe0   : > { %v445_v8 = vpop.f32.mrf.mxu0 }
  0xe1   : > { %320 = vst [vmem:[%s179_s30 + $0x18] sm:$0xff] %v445_v8 }
  0xe2   : > { %v276_v9 = vpop.f32.mrf.mxu0 }
  0xe3   : > { %v288_v10 = vadd.f32 %v276_v9, %v273_v7  ;;  %318 = vst [vmem:[%s179_s30 + $0x8] sm:$0xff] %v276_v9 }
  0xe5   : > { %v289_v11 = vadd.f32 %v444_v6, %v288_v10 }
  0xe7   : > { %v290_v12 = vadd.f32 %v445_v8, %v289_v11 }
  0xe9   : > { %v291_v13 = vrot.slane %v290_v12, 4 }
  0xeb   : > { %v292_v14 = vadd.f32 %v291_v13, %v290_v12 }
  0xed   : > { %v293_v15 = vrot.slane %v292_v14, 2 }
  0xef   : > { %v294_v16 = vadd.f32 %v293_v15, %v292_v14 }
  0xf1   : > { %v295_v17 = vrot.slane %v294_v16, 1 }
  0xf3   : > { %v296_v18 = vadd.f32 %v295_v17, %v294_v16 }
  0xf5   : > { %v297_v19 = vmul.f32 0.03125, %v296_v18  ;;  %315 = vst [vmem:[%s184_s7] sm:$0x1] %v296_v18 }
  0xf7   : > { %v298_v20 = vsub.f32 %v273_v7, %v297_v19  ;;  %v299_v21 = vsub.f32 %v276_v9, %v297_v19  ;;  %v300_v22 = vsub.f32 %v444_v6, %v297_v19  ;;  %v301_v23 = vsub.f32 %v445_v8, %v297_v19 }
  0xf9   : > { %v302_v24 = vmul.f32 %v298_v20, %v298_v20  ;;  %v303_v25 = vmul.f32 %v299_v21, %v299_v21  ;;  %v304_v26 = vmul.f32 %v300_v22, %v300_v22  ;;  %v305_v28 = vmul.f32 %v301_v23, %v301_v23 }
  0xfb   : > { %v306_v27 = vadd.f32 %v303_v25, %v302_v24 }
  0xfd   : > { %v307_v29 = vadd.f32 %v306_v27, %v304_v26 }
  0xff   : > { %v308_v30 = vadd.f32 %v307_v29, %v305_v28 }
 0x101   : > { %v309_v31 = vrot.slane %v308_v30, 4 }
 0x103   : > { %v310_v32 = vadd.f32 %v309_v31, %v308_v30 }
 0x105   : > { %v311_v33 = vrot.slane %v310_v32, 2 }
 0x107   : > { %v312_v34 = vadd.f32 %v311_v33, %v310_v32 }
 0x109   : > { %v313_v35 = vrot.slane %v312_v34, 1 }
 0x10b   : > { %v314_v36 = vadd.f32 %v313_v35, %v312_v34 }
 0x10d   : > { %316 = vst [vmem:[%s184_s7 + $0x1] sm:$0x1] %v314_v36 }
 0x10e PF: > { %s14_s12 = sadd.s32 1, %s466_s12  }
 0x10f   : > { %p11_p5 = scmp.ge.s32.totalorder %s14_s12, 4  }
 0x111   :  { %13 = sbr.rel (!%p11_p5) target bundleno = 1 (0x1), region = 70 }

</bundles_post_ra>
